<compile_context>
chip_gen: v6e
topology: v6e:2x2x1
jax: 0.10.0
libtpu: 0.0.40
codegen_flags: <defaults>
</compile_context>

<pallas_src>
import functools

import jax
import jax.numpy as jnp
from jax import lax
from jax.experimental import pallas as pl
from jax.experimental.pallas import tpu as pltpu


# ---------------------------------------------------------------------------
# In-kernel math helpers (trace-time only; become VPU/EUP ops)
# ---------------------------------------------------------------------------
def _erf(z):
    # Abramowitz & Stegun 7.1.26, |error| < 1.5e-7. exp() lands on the EUP slot.
    a1, a2, a3, a4, a5 = 0.254829592, -0.284496736, 1.421413741, -1.453152027, 1.061405429
    p = 0.3275911
    sgn = jnp.where(z >= 0.0, 1.0, -1.0)
    az = jnp.abs(z)
    t = 1.0 / (1.0 + p * az)
    poly = ((((a5 * t + a4) * t + a3) * t + a2) * t + a1) * t
    return sgn * (1.0 - poly * jnp.exp(-az * az))


def _gelu_exact(x):
    # nn.GELU() default (approximate='none'): 0.5 * x * (1 + erf(x / sqrt(2)))
    return 0.5 * x * (1.0 + _erf(x * 0.7071067811865476))


# ---------------------------------------------------------------------------
# im2col scatter: shifted copies of h (C, Bt*L) -> col_ref (K*C, Bt*L)
#   col[k*C + c, b*L + j] = h[c, b*L + (j + k - P)]  (zero outside [0, L))
# All slices are static; only the tiny halo columns are zero-filled.
# ---------------------------------------------------------------------------
def _im2col(col_ref, h, *, K, P, L, C, Bt):
    for k in range(K):
        r0 = k * C
        j_lo = max(0, P - k)
        j_hi = min(L, L + P - k)
        s0 = j_lo + k - P
        w = j_hi - j_lo
        for b in range(Bt):
            base = b * L
            if j_lo > 0:
                col_ref[r0:r0 + C, base:base + j_lo] = jnp.zeros((C, j_lo), col_ref.dtype)
            if j_hi < L:
                col_ref[r0:r0 + C, base + j_hi:base + L] = jnp.zeros((C, L - j_hi), col_ref.dtype)
            if w > 0:
                col_ref[r0:r0 + C, base + j_lo:base + j_hi] = h[:, base + s0:base + s0 + w]


# ---------------------------------------------------------------------------
# Pallas kernel: whole ResBlock for one batch tile (Bt elements, channels-major)
# ---------------------------------------------------------------------------
def _resblock_kernel(x_ref, w1_ref, w2_ref, s1_ref, b1_ref, s2_ref, b2_ref,
                     o_ref, col1_ref, col2_ref, *, K, P, L, Cin, Cout, Bt):
    # --- bn1 (folded) + exact GELU, f32 ------------------------------------
    h = _gelu_exact(x_ref[...] * s1_ref[...] + b1_ref[...])          # (Cin, Bt*L)

    # --- conv1 as a single im2col matmul (bf16 operands, f32 accumulate) ----
    _im2col(col1_ref, h, K=K, P=P, L=L, C=Cin, Bt=Bt)
    acc1 = jnp.dot(w1_ref[...], col1_ref[...].astype(jnp.bfloat16),
                   preferred_element_type=jnp.float32)               # (Cout, Bt*L)

    # --- bn2 (folded) + GELU -------------------------------------------------
    h2 = _gelu_exact(acc1 * s2_ref[...] + b2_ref[...])

    # --- conv2 ---------------------------------------------------------------
    _im2col(col2_ref, h2, K=K, P=P, L=L, C=Cout, Bt=Bt)
    acc2 = jnp.dot(w2_ref[...], col2_ref[...].astype(jnp.bfloat16),
                   preferred_element_type=jnp.float32)               # (Cout, Bt*L)

    # --- residual add (downsample is None); x re-read here, not kept live ----
    o_ref[...] = (acc2 + x_ref[...]).astype(o_ref.dtype)


# ---------------------------------------------------------------------------
# Wrapper: BN folding, im2col weight reshape, lane-dense layout plumbing
# ---------------------------------------------------------------------------
def _pick_batch_tile(B, Cin, Cout, K, L):
    # Per-element footprint (f32): double-buffered x/out blocks + two im2col
    # scratches. Budget kept well under v7x's 64 MiB VMEM (32 MiB default limit).
    budget = 20 * 1024 * 1024
    per_b = L * 4 * (Cin + Cout) * (K + 2)
    divs = [d for d in range(1, B + 1) if B % d == 0]
    # Block last dim must be a multiple of 128 unless it spans the full array.
    cands = [d for d in divs if d == B or (d * L) % 128 == 0] or [B]
    fitting = [d for d in cands if d * per_b <= budget and d * L <= 32768]
    return max(fitting) if fitting else min(cands)


def resblock_forward(x, w1, w2,
                     gamma1, beta1, mean1, var1,
                     gamma2, beta2, mean2, var2,
                     *, kernel_size, padding, eps=1e-5, batch_tile=None):
    """x: (B, Cin, L) f32.  Conv weights: (Cout, Cin, K) and (Cout, Cout, K)."""
    B, Cin, L = x.shape
    Cout = w1.shape[0]
    K, P = kernel_size, padding
    assert Cout == Cin, "residual add requires out_channels == in_channels (downsample=None)"
    assert L + 2 * P - K + 1 == L, "stride=1 conv must preserve length for the residual add"

    Bt = batch_tile if batch_tile is not None else _pick_batch_tile(B, Cin, Cout, K, L)
    assert B % Bt == 0
    NL = Bt * L

    # Fold BatchNorm (eval mode) into per-channel scale/shift — glue, not hot path.
    inv1 = gamma1 / jnp.sqrt(var1 + eps)
    inv2 = gamma2 / jnp.sqrt(var2 + eps)
    scale1 = inv1.reshape(Cin, 1).astype(jnp.float32)
    shift1 = (beta1 - mean1 * inv1).reshape(Cin, 1).astype(jnp.float32)
    scale2 = inv2.reshape(Cout, 1).astype(jnp.float32)
    shift2 = (beta2 - mean2 * inv2).reshape(Cout, 1).astype(jnp.float32)

    # im2col weight matrices: row block k holds tap k -> W[o, k*C + c] = w[o, c, k].
    # bf16 for the MXU (f32 accumulate inside the kernel).
    w1m = jnp.transpose(w1, (0, 2, 1)).reshape(Cout, K * Cin).astype(jnp.bfloat16)
    w2m = jnp.transpose(w2, (0, 2, 1)).reshape(Cout, K * Cout).astype(jnp.bfloat16)

    # Layout plumbing: channels-major slab (Cin, B*L) so the kernel's matmul N /
    # output store lane dim is Bt*L (lane-dense) instead of L.
    x_t = jnp.transpose(x, (1, 0, 2)).reshape(Cin, B * L).astype(jnp.float32)

    kernel = functools.partial(_resblock_kernel, K=K, P=P, L=L,
                               Cin=Cin, Cout=Cout, Bt=Bt)

    out_t = pl.pallas_call(
        kernel,
        out_shape=jax.ShapeDtypeStruct((Cout, B * L), jnp.float32),
        grid_spec=pltpu.PrefetchScalarGridSpec(
            num_scalar_prefetch=0,
            grid=(B // Bt,),
            in_specs=[
                pl.BlockSpec((Cin, NL), lambda i: (0, i)),            # x slab (per tile)
                pl.BlockSpec((Cout, K * Cin), lambda i: (0, 0)),      # w1 (im2col, bf16)
                pl.BlockSpec((Cout, K * Cout), lambda i: (0, 0)),     # w2 (im2col, bf16)
                pl.BlockSpec((Cin, 1), lambda i: (0, 0)),             # bn1 scale
                pl.BlockSpec((Cin, 1), lambda i: (0, 0)),             # bn1 shift
                pl.BlockSpec((Cout, 1), lambda i: (0, 0)),            # bn2 scale
                pl.BlockSpec((Cout, 1), lambda i: (0, 0)),            # bn2 shift
            ],
            out_specs=pl.BlockSpec((Cout, NL), lambda i: (0, i)),
            scratch_shapes=[
                pltpu.VMEM((K * Cin, NL), jnp.float32),               # im2col for conv1
                pltpu.VMEM((K * Cout, NL), jnp.float32),              # im2col for conv2
            ],
        ),
        compiler_params=pltpu.CompilerParams(dimension_semantics=("parallel",)),
    )(x_t, w1m, w2m, scale1, shift1, scale2, shift2)

    return jnp.transpose(out_t.reshape(Cout, B, L), (1, 0, 2))


# ---------------------------------------------------------------------------
# Pure-JAX reference (for sanity check only)
# ---------------------------------------------------------------------------
def _reference(x, w1, w2, g1, be1, m1, v1, g2, be2, m2, v2, *, padding, eps=1e-5):
    def bn(h, g, b, m, v):
        return (h - m[None, :, None]) / jnp.sqrt(v[None, :, None] + eps) * g[None, :, None] + b[None, :, None]

    dn = ("NCH", "OIH", "NCH")
    h = jax.nn.gelu(bn(x, g1, be1, m1, v1), approximate=False)
    h = lax.conv_general_dilated(h, w1, (1,), [(padding, padding)], dimension_numbers=dn)
    h = jax.nn.gelu(bn(h, g2, be2, m2, v2), approximate=False)
    h = lax.conv_general_dilated(h, w2, (1,), [(padding, padding)], dimension_numbers=dn)
    return h + x


if __name__ == "__main__":
    # Small shapes consistent with the module: ResBlock(in=8, out=8, k=3, stride=1, pad=1)
    B, C, L, K, P = 2, 8, 16, 3, 1

    key = jax.random.PRNGKey(0)
    ks = jax.random.split(key, 11)
    x = jax.random.normal(ks[0], (B, C, L), jnp.float32)
    w1 = jax.random.normal(ks[1], (C, C, K), jnp.float32) * 0.2
    w2 = jax.random.normal(ks[2], (C, C, K), jnp.float32) * 0.2
    gamma1 = jax.random.uniform(ks[3], (C,), jnp.float32, 0.5, 1.5)
    beta1 = jax.random.normal(ks[4], (C,), jnp.float32) * 0.1
    mean1 = jax.random.normal(ks[5], (C,), jnp.float32) * 0.1
    var1 = jax.random.uniform(ks[6], (C,), jnp.float32, 0.5, 1.5)
    gamma2 = jax.random.uniform(ks[7], (C,), jnp.float32, 0.5, 1.5)
    beta2 = jax.random.normal(ks[8], (C,), jnp.float32) * 0.1
    mean2 = jax.random.normal(ks[9], (C,), jnp.float32) * 0.1
    var2 = jax.random.uniform(ks[10], (C,), jnp.float32, 0.5, 1.5)

    out = resblock_forward(x, w1, w2,
                           gamma1, beta1, mean1, var1,
                           gamma2, beta2, mean2, var2,
                           kernel_size=K, padding=P)
    out = jax.block_until_ready(out)

    ref = jax.block_until_ready(_reference(x, w1, w2, gamma1, beta1, mean1, var1,
                                           gamma2, beta2, mean2, var2, padding=P))
    max_err = float(jnp.max(jnp.abs(out - ref)))
    assert out.shape == (B, C, L)
    # bf16 MXU operands (f32 accumulation) across two convs + A&S erf (~1.5e-7):
    # tolerance is generous for the bf16 rounding but far below any structural bug.
    assert max_err < 1.5e-1, f"mismatch vs reference: {max_err}"
    print("KERNEL_OK")
</pallas_src>

<mosaic_0001>
module attributes {stable_mosaic.version = 11 : i64} {
  func.func @_resblock_kernel(%arg0: i32, %arg1: memref<8x32xf32, #tpu.memory_space<vmem>>, %arg2: memref<8x24xbf16, #tpu.memory_space<vmem>>, %arg3: memref<8x24xbf16, #tpu.memory_space<vmem>>, %arg4: memref<8x1xf32, #tpu.memory_space<vmem>>, %arg5: memref<8x1xf32, #tpu.memory_space<vmem>>, %arg6: memref<8x1xf32, #tpu.memory_space<vmem>>, %arg7: memref<8x1xf32, #tpu.memory_space<vmem>>, %arg8: memref<8x32xf32, #tpu.memory_space<vmem>>, %arg9: memref<24x32xf32, #tpu.memory_space<vmem>>, %arg10: memref<24x32xf32, #tpu.memory_space<vmem>>) attributes {dimension_semantics = [#tpu.dimension_semantics<parallel>], iteration_bounds = array<i64: 1>, scalar_prefetch = 0 : i64, scratch_operands = 2 : i64, tpu.core_type = #tpu.core_type<tc>, window_params = [{transform_indices = @transform_0, window_bounds = array<i64: 8, 32>}, {pipeline_mode = #tpu.pipeline_mode<synchronous>, transform_indices = @transform_1, window_bounds = array<i64: 8, 24>}, {pipeline_mode = #tpu.pipeline_mode<synchronous>, transform_indices = @transform_2, window_bounds = array<i64: 8, 24>}, {pipeline_mode = #tpu.pipeline_mode<synchronous>, transform_indices = @transform_3, window_bounds = array<i64: 8, 1>}, {pipeline_mode = #tpu.pipeline_mode<synchronous>, transform_indices = @transform_4, window_bounds = array<i64: 8, 1>}, {pipeline_mode = #tpu.pipeline_mode<synchronous>, transform_indices = @transform_5, window_bounds = array<i64: 8, 1>}, {pipeline_mode = #tpu.pipeline_mode<synchronous>, transform_indices = @transform_6, window_bounds = array<i64: 8, 1>}, {transform_indices = @transform_7, window_bounds = array<i64: 8, 32>}]} {
    %c0 = arith.constant 0 : index
    %c0_0 = arith.constant 0 : index
    %0 = vector.load %arg1[%c0, %c0_0] : memref<8x32xf32, #tpu.memory_space<vmem>>, vector<8x32xf32>
    %c0_1 = arith.constant 0 : index
    %c0_2 = arith.constant 0 : index
    %1 = vector.load %arg4[%c0_1, %c0_2] : memref<8x1xf32, #tpu.memory_space<vmem>>, vector<8x1xf32>
    %2 = vector.broadcast %1 : vector<8x1xf32> to vector<8x32xf32>
    %3 = arith.mulf %0, %2 : vector<8x32xf32>
    %c0_3 = arith.constant 0 : index
    %c0_4 = arith.constant 0 : index
    %4 = vector.load %arg5[%c0_3, %c0_4] : memref<8x1xf32, #tpu.memory_space<vmem>>, vector<8x1xf32>
    %5 = vector.broadcast %4 : vector<8x1xf32> to vector<8x32xf32>
    %6 = arith.addf %3, %5 : vector<8x32xf32>
    %cst = arith.constant 5.000000e-01 : f32
    %7 = vector.broadcast %cst : f32 to vector<8x32xf32>
    %8 = arith.mulf %7, %6 : vector<8x32xf32>
    %cst_5 = arith.constant 0.707106769 : f32
    %9 = vector.broadcast %cst_5 : f32 to vector<8x32xf32>
    %10 = arith.mulf %6, %9 : vector<8x32xf32>
    %cst_6 = arith.constant 0.000000e+00 : f32
    %11 = vector.broadcast %cst_6 : f32 to vector<8x32xf32>
    %12 = arith.cmpf oge, %10, %11 : vector<8x32xf32>
    %cst_7 = arith.constant 1.000000e+00 : f32
    %cst_8 = arith.constant -1.000000e+00 : f32
    %13 = vector.broadcast %cst_7 : f32 to vector<8x32xf32>
    %14 = vector.broadcast %cst_8 : f32 to vector<8x32xf32>
    %15 = arith.select %12, %13, %14 : vector<8x32xi1>, vector<8x32xf32>
    %16 = math.absf %10 : vector<8x32xf32>
    %cst_9 = arith.constant 0.327591091 : f32
    %17 = vector.broadcast %cst_9 : f32 to vector<8x32xf32>
    %18 = arith.mulf %17, %16 : vector<8x32xf32>
    %cst_10 = arith.constant 1.000000e+00 : f32
    %19 = vector.broadcast %cst_10 : f32 to vector<8x32xf32>
    %20 = arith.addf %19, %18 : vector<8x32xf32>
    %cst_11 = arith.constant 1.000000e+00 : f32
    %21 = vector.broadcast %cst_11 : f32 to vector<8x32xf32>
    %22 = arith.divf %21, %20 : vector<8x32xf32>
    %cst_12 = arith.constant 1.06140542 : f32
    %23 = vector.broadcast %cst_12 : f32 to vector<8x32xf32>
    %24 = arith.mulf %23, %22 : vector<8x32xf32>
    %cst_13 = arith.constant -1.45315206 : f32
    %25 = vector.broadcast %cst_13 : f32 to vector<8x32xf32>
    %26 = arith.addf %24, %25 : vector<8x32xf32>
    %27 = arith.mulf %26, %22 : vector<8x32xf32>
    %cst_14 = arith.constant 1.42141378 : f32
    %28 = vector.broadcast %cst_14 : f32 to vector<8x32xf32>
    %29 = arith.addf %27, %28 : vector<8x32xf32>
    %30 = arith.mulf %29, %22 : vector<8x32xf32>
    %cst_15 = arith.constant -0.284496725 : f32
    %31 = vector.broadcast %cst_15 : f32 to vector<8x32xf32>
    %32 = arith.addf %30, %31 : vector<8x32xf32>
    %33 = arith.mulf %32, %22 : vector<8x32xf32>
    %cst_16 = arith.constant 0.254829586 : f32
    %34 = vector.broadcast %cst_16 : f32 to vector<8x32xf32>
    %35 = arith.addf %33, %34 : vector<8x32xf32>
    %36 = arith.mulf %35, %22 : vector<8x32xf32>
    %cst_17 = arith.constant 0.000000e+00 : f32
    %37 = vector.broadcast %cst_17 : f32 to vector<8x32xf32>
    %38 = arith.subf %37, %16 : vector<8x32xf32>
    %39 = arith.mulf %38, %16 : vector<8x32xf32>
    %40 = math.exp %39 : vector<8x32xf32>
    %41 = arith.mulf %36, %40 : vector<8x32xf32>
    %cst_18 = arith.constant 1.000000e+00 : f32
    %42 = vector.broadcast %cst_18 : f32 to vector<8x32xf32>
    %43 = arith.subf %42, %41 : vector<8x32xf32>
    %44 = arith.mulf %15, %43 : vector<8x32xf32>
    %cst_19 = arith.constant 1.000000e+00 : f32
    %45 = vector.broadcast %cst_19 : f32 to vector<8x32xf32>
    %46 = arith.addf %45, %44 : vector<8x32xf32>
    %47 = arith.mulf %8, %46 : vector<8x32xf32>
    %cst_20 = arith.constant 0.000000e+00 : f32
    %48 = vector.broadcast %cst_20 : f32 to vector<8x1xf32>
    %c0_21 = arith.constant 0 : index
    %c0_22 = arith.constant 0 : index
    %49 = vector.load %arg9[%c0_21, %c0_22] : memref<24x32xf32, #tpu.memory_space<vmem>>, vector<8x1xf32>
    tpu.vector_store %arg9[%c0_21, %c0_22], %48 {strides = array<i32>} : memref<24x32xf32, #tpu.memory_space<vmem>>, vector<8x1xf32>,
    %50 = vector.extract_strided_slice %47 {offsets = [0, 0], sizes = [8, 15], strides = [1, 1]} : vector<8x32xf32> to vector<8x15xf32>
    %c0_23 = arith.constant 0 : index
    %c1 = arith.constant 1 : index
    %51 = vector.load %arg9[%c0_23, %c1] : memref<24x32xf32, #tpu.memory_space<vmem>>, vector<8x15xf32>
    tpu.vector_store %arg9[%c0_23, %c1], %50 {strides = array<i32>} : memref<24x32xf32, #tpu.memory_space<vmem>>, vector<8x15xf32>,
    %cst_24 = arith.constant 0.000000e+00 : f32
    %52 = vector.broadcast %cst_24 : f32 to vector<8x1xf32>
    %c0_25 = arith.constant 0 : index
    %c16 = arith.constant 16 : index
    %53 = vector.load %arg9[%c0_25, %c16] : memref<24x32xf32, #tpu.memory_space<vmem>>, vector<8x1xf32>
    tpu.vector_store %arg9[%c0_25, %c16], %52 {strides = array<i32>} : memref<24x32xf32, #tpu.memory_space<vmem>>, vector<8x1xf32>,
    %54 = vector.extract_strided_slice %47 {offsets = [0, 16], sizes = [8, 15], strides = [1, 1]} : vector<8x32xf32> to vector<8x15xf32>
    %c0_26 = arith.constant 0 : index
    %c17 = arith.constant 17 : index
    %55 = vector.load %arg9[%c0_26, %c17] : memref<24x32xf32, #tpu.memory_space<vmem>>, vector<8x15xf32>
    tpu.vector_store %arg9[%c0_26, %c17], %54 {strides = array<i32>} : memref<24x32xf32, #tpu.memory_space<vmem>>, vector<8x15xf32>,
    %56 = vector.extract_strided_slice %47 {offsets = [0, 0], sizes = [8, 16], strides = [1, 1]} : vector<8x32xf32> to vector<8x16xf32>
    %c8 = arith.constant 8 : index
    %c0_27 = arith.constant 0 : index
    %57 = vector.load %arg9[%c8, %c0_27] : memref<24x32xf32, #tpu.memory_space<vmem>>, vector<8x16xf32>
    tpu.vector_store %arg9[%c8, %c0_27], %56 {strides = array<i32>} : memref<24x32xf32, #tpu.memory_space<vmem>>, vector<8x16xf32>,
    %58 = vector.extract_strided_slice %47 {offsets = [0, 16], sizes = [8, 16], strides = [1, 1]} : vector<8x32xf32> to vector<8x16xf32>
    %c8_28 = arith.constant 8 : index
    %c16_29 = arith.constant 16 : index
    %59 = vector.load %arg9[%c8_28, %c16_29] : memref<24x32xf32, #tpu.memory_space<vmem>>, vector<8x16xf32>
    tpu.vector_store %arg9[%c8_28, %c16_29], %58 {strides = array<i32>} : memref<24x32xf32, #tpu.memory_space<vmem>>, vector<8x16xf32>,
    %cst_30 = arith.constant 0.000000e+00 : f32
    %60 = vector.broadcast %cst_30 : f32 to vector<8x1xf32>
    %c16_31 = arith.constant 16 : index
    %c15 = arith.constant 15 : index
    %61 = vector.load %arg9[%c16_31, %c15] : memref<24x32xf32, #tpu.memory_space<vmem>>, vector<8x1xf32>
    tpu.vector_store %arg9[%c16_31, %c15], %60 {strides = array<i32>} : memref<24x32xf32, #tpu.memory_space<vmem>>, vector<8x1xf32>,
    %62 = vector.extract_strided_slice %47 {offsets = [0, 1], sizes = [8, 15], strides = [1, 1]} : vector<8x32xf32> to vector<8x15xf32>
    %c16_32 = arith.constant 16 : index
    %c0_33 = arith.constant 0 : index
    %63 = vector.load %arg9[%c16_32, %c0_33] : memref<24x32xf32, #tpu.memory_space<vmem>>, vector<8x15xf32>
    tpu.vector_store %arg9[%c16_32, %c0_33], %62 {strides = array<i32>} : memref<24x32xf32, #tpu.memory_space<vmem>>, vector<8x15xf32>,
    %cst_34 = arith.constant 0.000000e+00 : f32
    %64 = vector.broadcast %cst_34 : f32 to vector<8x1xf32>
    %c16_35 = arith.constant 16 : index
    %c31 = arith.constant 31 : index
    %65 = vector.load %arg9[%c16_35, %c31] : memref<24x32xf32, #tpu.memory_space<vmem>>, vector<8x1xf32>
    tpu.vector_store %arg9[%c16_35, %c31], %64 {strides = array<i32>} : memref<24x32xf32, #tpu.memory_space<vmem>>, vector<8x1xf32>,
    %66 = vector.extract_strided_slice %47 {offsets = [0, 17], sizes = [8, 15], strides = [1, 1]} : vector<8x32xf32> to vector<8x15xf32>
    %c16_36 = arith.constant 16 : index
    %c16_37 = arith.constant 16 : index
    %67 = vector.load %arg9[%c16_36, %c16_37] : memref<24x32xf32, #tpu.memory_space<vmem>>, vector<8x15xf32>
    tpu.vector_store %arg9[%c16_36, %c16_37], %66 {strides = array<i32>} : memref<24x32xf32, #tpu.memory_space<vmem>>, vector<8x15xf32>,
    %c0_38 = arith.constant 0 : index
    %c0_39 = arith.constant 0 : index
    %68 = vector.load %arg2[%c0_38, %c0_39] : memref<8x24xbf16, #tpu.memory_space<vmem>>, vector<8x24xbf16>
    %c0_40 = arith.constant 0 : index
    %c0_41 = arith.constant 0 : index
    %69 = vector.load %arg9[%c0_40, %c0_41] : memref<24x32xf32, #tpu.memory_space<vmem>>, vector<24x32xf32>
    %70 = arith.truncf %69 : vector<24x32xf32> to vector<24x32xbf16>
    %cst_42 = arith.constant dense<0.000000e+00> : vector<8x32xf32>
    %71 = tpu.matmul %68, %70, %cst_42 {dimension_numbers = #tpu.dot_dimension_numbers<[1], [0], [0], [1], [0, 0, 1, 1], [], []>} : vector<8x24xbf16>, vector<24x32xbf16>, vector<8x32xf32> -> vector<8x32xf32>
    %c0_43 = arith.constant 0 : index
    %c0_44 = arith.constant 0 : index
    %72 = vector.load %arg6[%c0_43, %c0_44] : memref<8x1xf32, #tpu.memory_space<vmem>>, vector<8x1xf32>
    %73 = vector.broadcast %72 : vector<8x1xf32> to vector<8x32xf32>
    %74 = arith.mulf %71, %73 : vector<8x32xf32>
    %c0_45 = arith.constant 0 : index
    %c0_46 = arith.constant 0 : index
    %75 = vector.load %arg7[%c0_45, %c0_46] : memref<8x1xf32, #tpu.memory_space<vmem>>, vector<8x1xf32>
    %76 = vector.broadcast %75 : vector<8x1xf32> to vector<8x32xf32>
    %77 = arith.addf %74, %76 : vector<8x32xf32>
    %cst_47 = arith.constant 5.000000e-01 : f32
    %78 = vector.broadcast %cst_47 : f32 to vector<8x32xf32>
    %79 = arith.mulf %78, %77 : vector<8x32xf32>
    %cst_48 = arith.constant 0.707106769 : f32
    %80 = vector.broadcast %cst_48 : f32 to vector<8x32xf32>
    %81 = arith.mulf %77, %80 : vector<8x32xf32>
    %cst_49 = arith.constant 0.000000e+00 : f32
    %82 = vector.broadcast %cst_49 : f32 to vector<8x32xf32>
    %83 = arith.cmpf oge, %81, %82 : vector<8x32xf32>
    %cst_50 = arith.constant 1.000000e+00 : f32
    %cst_51 = arith.constant -1.000000e+00 : f32
    %84 = vector.broadcast %cst_50 : f32 to vector<8x32xf32>
    %85 = vector.broadcast %cst_51 : f32 to vector<8x32xf32>
    %86 = arith.select %83, %84, %85 : vector<8x32xi1>, vector<8x32xf32>
    %87 = math.absf %81 : vector<8x32xf32>
    %cst_52 = arith.constant 0.327591091 : f32
    %88 = vector.broadcast %cst_52 : f32 to vector<8x32xf32>
    %89 = arith.mulf %88, %87 : vector<8x32xf32>
    %cst_53 = arith.constant 1.000000e+00 : f32
    %90 = vector.broadcast %cst_53 : f32 to vector<8x32xf32>
    %91 = arith.addf %90, %89 : vector<8x32xf32>
    %cst_54 = arith.constant 1.000000e+00 : f32
    %92 = vector.broadcast %cst_54 : f32 to vector<8x32xf32>
    %93 = arith.divf %92, %91 : vector<8x32xf32>
    %cst_55 = arith.constant 1.06140542 : f32
    %94 = vector.broadcast %cst_55 : f32 to vector<8x32xf32>
    %95 = arith.mulf %94, %93 : vector<8x32xf32>
    %cst_56 = arith.constant -1.45315206 : f32
    %96 = vector.broadcast %cst_56 : f32 to vector<8x32xf32>
    %97 = arith.addf %95, %96 : vector<8x32xf32>
    %98 = arith.mulf %97, %93 : vector<8x32xf32>
    %cst_57 = arith.constant 1.42141378 : f32
    %99 = vector.broadcast %cst_57 : f32 to vector<8x32xf32>
    %100 = arith.addf %98, %99 : vector<8x32xf32>
    %101 = arith.mulf %100, %93 : vector<8x32xf32>
    %cst_58 = arith.constant -0.284496725 : f32
    %102 = vector.broadcast %cst_58 : f32 to vector<8x32xf32>
    %103 = arith.addf %101, %102 : vector<8x32xf32>
    %104 = arith.mulf %103, %93 : vector<8x32xf32>
    %cst_59 = arith.constant 0.254829586 : f32
    %105 = vector.broadcast %cst_59 : f32 to vector<8x32xf32>
    %106 = arith.addf %104, %105 : vector<8x32xf32>
    %107 = arith.mulf %106, %93 : vector<8x32xf32>
    %cst_60 = arith.constant 0.000000e+00 : f32
    %108 = vector.broadcast %cst_60 : f32 to vector<8x32xf32>
    %109 = arith.subf %108, %87 : vector<8x32xf32>
    %110 = arith.mulf %109, %87 : vector<8x32xf32>
    %111 = math.exp %110 : vector<8x32xf32>
    %112 = arith.mulf %107, %111 : vector<8x32xf32>
    %cst_61 = arith.constant 1.000000e+00 : f32
    %113 = vector.broadcast %cst_61 : f32 to vector<8x32xf32>
    %114 = arith.subf %113, %112 : vector<8x32xf32>
    %115 = arith.mulf %86, %114 : vector<8x32xf32>
    %cst_62 = arith.constant 1.000000e+00 : f32
    %116 = vector.broadcast %cst_62 : f32 to vector<8x32xf32>
    %117 = arith.addf %116, %115 : vector<8x32xf32>
    %118 = arith.mulf %79, %117 : vector<8x32xf32>
    %cst_63 = arith.constant 0.000000e+00 : f32
    %119 = vector.broadcast %cst_63 : f32 to vector<8x1xf32>
    %c0_64 = arith.constant 0 : index
    %c0_65 = arith.constant 0 : index
    %120 = vector.load %arg10[%c0_64, %c0_65] : memref<24x32xf32, #tpu.memory_space<vmem>>, vector<8x1xf32>
    tpu.vector_store %arg10[%c0_64, %c0_65], %119 {strides = array<i32>} : memref<24x32xf32, #tpu.memory_space<vmem>>, vector<8x1xf32>,
    %121 = vector.extract_strided_slice %118 {offsets = [0, 0], sizes = [8, 15], strides = [1, 1]} : vector<8x32xf32> to vector<8x15xf32>
    %c0_66 = arith.constant 0 : index
    %c1_67 = arith.constant 1 : index
    %122 = vector.load %arg10[%c0_66, %c1_67] : memref<24x32xf32, #tpu.memory_space<vmem>>, vector<8x15xf32>
    tpu.vector_store %arg10[%c0_66, %c1_67], %121 {strides = array<i32>} : memref<24x32xf32, #tpu.memory_space<vmem>>, vector<8x15xf32>,
    %cst_68 = arith.constant 0.000000e+00 : f32
    %123 = vector.broadcast %cst_68 : f32 to vector<8x1xf32>
    %c0_69 = arith.constant 0 : index
    %c16_70 = arith.constant 16 : index
    %124 = vector.load %arg10[%c0_69, %c16_70] : memref<24x32xf32, #tpu.memory_space<vmem>>, vector<8x1xf32>
    tpu.vector_store %arg10[%c0_69, %c16_70], %123 {strides = array<i32>} : memref<24x32xf32, #tpu.memory_space<vmem>>, vector<8x1xf32>,
    %125 = vector.extract_strided_slice %118 {offsets = [0, 16], sizes = [8, 15], strides = [1, 1]} : vector<8x32xf32> to vector<8x15xf32>
    %c0_71 = arith.constant 0 : index
    %c17_72 = arith.constant 17 : index
    %126 = vector.load %arg10[%c0_71, %c17_72] : memref<24x32xf32, #tpu.memory_space<vmem>>, vector<8x15xf32>
    tpu.vector_store %arg10[%c0_71, %c17_72], %125 {strides = array<i32>} : memref<24x32xf32, #tpu.memory_space<vmem>>, vector<8x15xf32>,
    %127 = vector.extract_strided_slice %118 {offsets = [0, 0], sizes = [8, 16], strides = [1, 1]} : vector<8x32xf32> to vector<8x16xf32>
    %c8_73 = arith.constant 8 : index
    %c0_74 = arith.constant 0 : index
    %128 = vector.load %arg10[%c8_73, %c0_74] : memref<24x32xf32, #tpu.memory_space<vmem>>, vector<8x16xf32>
    tpu.vector_store %arg10[%c8_73, %c0_74], %127 {strides = array<i32>} : memref<24x32xf32, #tpu.memory_space<vmem>>, vector<8x16xf32>,
    %129 = vector.extract_strided_slice %118 {offsets = [0, 16], sizes = [8, 16], strides = [1, 1]} : vector<8x32xf32> to vector<8x16xf32>
    %c8_75 = arith.constant 8 : index
    %c16_76 = arith.constant 16 : index
    %130 = vector.load %arg10[%c8_75, %c16_76] : memref<24x32xf32, #tpu.memory_space<vmem>>, vector<8x16xf32>
    tpu.vector_store %arg10[%c8_75, %c16_76], %129 {strides = array<i32>} : memref<24x32xf32, #tpu.memory_space<vmem>>, vector<8x16xf32>,
    %cst_77 = arith.constant 0.000000e+00 : f32
    %131 = vector.broadcast %cst_77 : f32 to vector<8x1xf32>
    %c16_78 = arith.constant 16 : index
    %c15_79 = arith.constant 15 : index
    %132 = vector.load %arg10[%c16_78, %c15_79] : memref<24x32xf32, #tpu.memory_space<vmem>>, vector<8x1xf32>
    tpu.vector_store %arg10[%c16_78, %c15_79], %131 {strides = array<i32>} : memref<24x32xf32, #tpu.memory_space<vmem>>, vector<8x1xf32>,
    %133 = vector.extract_strided_slice %118 {offsets = [0, 1], sizes = [8, 15], strides = [1, 1]} : vector<8x32xf32> to vector<8x15xf32>
    %c16_80 = arith.constant 16 : index
    %c0_81 = arith.constant 0 : index
    %134 = vector.load %arg10[%c16_80, %c0_81] : memref<24x32xf32, #tpu.memory_space<vmem>>, vector<8x15xf32>
    tpu.vector_store %arg10[%c16_80, %c0_81], %133 {strides = array<i32>} : memref<24x32xf32, #tpu.memory_space<vmem>>, vector<8x15xf32>,
    %cst_82 = arith.constant 0.000000e+00 : f32
    %135 = vector.broadcast %cst_82 : f32 to vector<8x1xf32>
    %c16_83 = arith.constant 16 : index
    %c31_84 = arith.constant 31 : index
    %136 = vector.load %arg10[%c16_83, %c31_84] : memref<24x32xf32, #tpu.memory_space<vmem>>, vector<8x1xf32>
    tpu.vector_store %arg10[%c16_83, %c31_84], %135 {strides = array<i32>} : memref<24x32xf32, #tpu.memory_space<vmem>>, vector<8x1xf32>,
    %137 = vector.extract_strided_slice %118 {offsets = [0, 17], sizes = [8, 15], strides = [1, 1]} : vector<8x32xf32> to vector<8x15xf32>
    %c16_85 = arith.constant 16 : index
    %c16_86 = arith.constant 16 : index
    %138 = vector.load %arg10[%c16_85, %c16_86] : memref<24x32xf32, #tpu.memory_space<vmem>>, vector<8x15xf32>
    tpu.vector_store %arg10[%c16_85, %c16_86], %137 {strides = array<i32>} : memref<24x32xf32, #tpu.memory_space<vmem>>, vector<8x15xf32>,
    %c0_87 = arith.constant 0 : index
    %c0_88 = arith.constant 0 : index
    %139 = vector.load %arg3[%c0_87, %c0_88] : memref<8x24xbf16, #tpu.memory_space<vmem>>, vector<8x24xbf16>
    %c0_89 = arith.constant 0 : index
    %c0_90 = arith.constant 0 : index
    %140 = vector.load %arg10[%c0_89, %c0_90] : memref<24x32xf32, #tpu.memory_space<vmem>>, vector<24x32xf32>
    %141 = arith.truncf %140 : vector<24x32xf32> to vector<24x32xbf16>
    %cst_91 = arith.constant dense<0.000000e+00> : vector<8x32xf32>
    %142 = tpu.matmul %139, %141, %cst_91 {dimension_numbers = #tpu.dot_dimension_numbers<[1], [0], [0], [1], [0, 0, 1, 1], [], []>} : vector<8x24xbf16>, vector<24x32xbf16>, vector<8x32xf32> -> vector<8x32xf32>
    %c0_92 = arith.constant 0 : index
    %c0_93 = arith.constant 0 : index
    %143 = vector.load %arg1[%c0_92, %c0_93] : memref<8x32xf32, #tpu.memory_space<vmem>>, vector<8x32xf32>
    %144 = arith.addf %142, %143 : vector<8x32xf32>
    %c0_94 = arith.constant 0 : index
    %c0_95 = arith.constant 0 : index
    %145 = vector.load %arg8[%c0_94, %c0_95] : memref<8x32xf32, #tpu.memory_space<vmem>>, vector<8x32xf32>
    tpu.vector_store %arg8[%c0_94, %c0_95], %144 {strides = array<i32>} : memref<8x32xf32, #tpu.memory_space<vmem>>, vector<8x32xf32>,
    return
  }
  func.func @transform_0(%arg0: i32) -> (i32, i32) {
    %c0_i32 = arith.constant 0 : i32
    %c0_i32_0 = arith.constant 0 : i32
    return %c0_i32, %arg0 : i32, i32
  }
  func.func @transform_1(%arg0: i32) -> (i32, i32) {
    %c0_i32 = arith.constant 0 : i32
    %c0_i32_0 = arith.constant 0 : i32
    %c0_i32_1 = arith.constant 0 : i32
    return %c0_i32, %c0_i32_0 : i32, i32
  }
  func.func @transform_2(%arg0: i32) -> (i32, i32) {
    %c0_i32 = arith.constant 0 : i32
    %c0_i32_0 = arith.constant 0 : i32
    %c0_i32_1 = arith.constant 0 : i32
    return %c0_i32, %c0_i32_0 : i32, i32
  }
  func.func @transform_3(%arg0: i32) -> (i32, i32) {
    %c0_i32 = arith.constant 0 : i32
    %c0_i32_0 = arith.constant 0 : i32
    %c0_i32_1 = arith.constant 0 : i32
    return %c0_i32, %c0_i32_0 : i32, i32
  }
  func.func @transform_4(%arg0: i32) -> (i32, i32) {
    %c0_i32 = arith.constant 0 : i32
    %c0_i32_0 = arith.constant 0 : i32
    %c0_i32_1 = arith.constant 0 : i32
    return %c0_i32, %c0_i32_0 : i32, i32
  }
  func.func @transform_5(%arg0: i32) -> (i32, i32) {
    %c0_i32 = arith.constant 0 : i32
    %c0_i32_0 = arith.constant 0 : i32
    %c0_i32_1 = arith.constant 0 : i32
    return %c0_i32, %c0_i32_0 : i32, i32
  }
  func.func @transform_6(%arg0: i32) -> (i32, i32) {
    %c0_i32 = arith.constant 0 : i32
    %c0_i32_0 = arith.constant 0 : i32
    %c0_i32_1 = arith.constant 0 : i32
    return %c0_i32, %c0_i32_0 : i32, i32
  }
  func.func @transform_7(%arg0: i32) -> (i32, i32) {
    %c0_i32 = arith.constant 0 : i32
    %c0_i32_0 = arith.constant 0 : i32
    return %c0_i32, %arg0 : i32, i32
  }
}

</mosaic_0001>

<bundles_post_ra>
// kernel: tpu_custom_call.1
= control target key start
LH: loop header
LB: loop body
LE: loop exit
PB: predicated region body
PF: predicated region fallthrough
CT: control target
= control target key end

     0   :  { %v341_v1 = vmov 0   ;;  %s456_s0 = inlined_call_operand.vmem [shape: f32[8,32], index: 0, kind: input, shape index: {}]   ;;  %s457_s1 = inlined_call_operand.vmem [shape: bf16[8,24], index: 1, kind: input, shape index: {}]   ;;  %s458_s2 = inlined_call_operand.vmem [shape: bf16[8,24], index: 2, kind: input, shape index: {}]   ;;  %s459_s3 = inlined_call_operand.vmem [shape: f32[8,1], index: 3, kind: input, shape index: {}]   ;;  %s460_s4 = inlined_call_operand.vmem [shape: f32[8,1], index: 4, kind: input, shape index: {}]   ;;  %s461_s5 = inlined_call_operand.vmem [shape: f32[8,1], index: 5, kind: input, shape index: {}]   ;;  %s462_s6 = inlined_call_operand.vmem [shape: f32[8,1], index: 6, kind: input, shape index: {}]   ;;  %s463_s7 = inlined_call_operand.hbm [shape: f32[8,32], index: 7, kind: output, shape index: {}]  }
   0x1   :  { %v29_v0 = vld [vmem:[%s459_s3] sm:$0xff]  ;;  %309 = vset.pattern.permute.xlu0 %v341_v1  ;;  %310 = vset.pattern.permute.xlu1 %v341_v1 }
   0x2   :  { %12 = vsyncpa [#allocation5], 0  ;;  %32 = vperm.xlu0 %309, %v29_v0   ;;  %v36_v2 = vld [vmem:[%s460_s4] sm:$0xff]  ;;  %vm86_vm0 = vcmask 130168   ;;  %v342_v4 = vmov 0.0   ;;  %vm70_vm1 = vcmask 7168  }
   0x3   :  { %v151_v3 = vld [vmem:[%s461_s5] sm:$0xff]  ;;  %87 = vst.msk [vmem:[#allocation2 + $0x10] sm:$0xff] %vm86_vm0, %v342_v4  ;;  %202 = vst.msk [vmem:[#allocation3 + $0x10] sm:$0xff] %vm86_vm0, %v342_v4  ;;  %286 = vmatprep.subr.bf16.mxu0 %v342_v4  ;;  %294 = vmatprep.subr.bf16.mxu1 %v342_v4  ;;  %v343_v30 = vmov -1.0   ;;  %vm82_vm3 = vcmask 130048   ;;  %vm84_vm4 = vcmask 261248  }
   0x4   :  { %v404_v6 = vld [vmem:[%s456_s0] sm:$0xff]  ;;  %71 = vst.msk [vmem:[#allocation2] sm:$0xff] %vm70_vm1, %v342_v4  ;;  %192 = vst.msk [vmem:[#allocation3] sm:$0xff] %vm70_vm1, %v342_v4  ;;  %s344_s0 = smov 127   ;;  %s345_s4 = smov 1   ;;  %vm346_vm5 = vmmov 0  }
   0x5   :  { %290 = vmatprep.mubr.msk.bf16.mxu0 %vm346_vm5, %v342_v4  ;;  %298 = vmatprep.mubr.msk.bf16.mxu1 %vm346_vm5, %v342_v4  ;;  %v158_v36 = vld [vmem:[%s462_s6] sm:$0xff]  ;;  %vm91_vm6 = vcmask 121856   ;;  %vm93_vm7 = vcmask 261368   ;;  %vm95_vm8 = vcmask 253056   ;;  %vm76_vm9 = vcmask 130056   ;;  %s347_s11 = smov [#allocation4]  }
   0x6   :  { %39 = vperm.xlu0 %309, %v36_v2   ;;  %vm78_vm10 = vcmask 138368   ;;  %vm80_vm11 = vcmask 261256   ;;  %vm107_vm12 = vcmask 1043456   ;;  %v97_v45 = vld [vmem:[%s457_s1] sm:$0xf]  ;;  %vm103_vm13 = vcmask 195584  }
   0x7   :  { %s270_s12 = sshll.u32 %s347_s11, 4  ;;  %vm262_vm15 = vcmask 261120   ;;  %s271_s12 = int_to_ptr.vmem [resolvable:$true] %s270_s12 }
   0x8   :  { %s319_s13 = scalar_lea.vmem %s271_s12, 128  ;;  %p324_p1 = scmp.lt.s32.totalorder %s271_s12, %s271_s12 }
   0x9   :  { %p320_p0 = scmp.ne.s32.totalorder %s271_s12, %s319_s13  ;;  %p325_p2 = scmp.lt.s32.totalorder %s319_s13, %s319_s13 }
   0xa   :  { %154 = vperm.xlu0 %309, %v151_v3  }
   0xb   :  { %p326_p3 = por %p325_p2, %p324_p1 }
   0xd   :  { %p327_p4 = pnand %p326_p3, %p320_p0 }
  0x7d   :  { %v33_v5 = vpop.permute.xlu0 %32 }
  0x7e   :  { %v35_v7 = vmul.f32 %v33_v5, %v404_v6 }
  0x81   :  { %v40_v8 = vpop.permute.xlu0 %39 }
  0x82   :  { %v42_v9 = vadd.f32 %v40_v8, %v35_v7 }
  0x84   :  { %v44_v10 = vmul.f32 0.70710677, %v42_v9  ;;  %v43_v33 = vmul.f32 0.5, %v42_v9 }
  0x85   :  { %v155_v46 = vpop.permute.xlu0 %154 }
  0x86   :  { %v47_v11 = vand.u32 2147483647, %v44_v10  ;;  %vm45_vm2 = vcmp.ge.f32.partialorder %v44_v10, 0.0 }
  0x87   :  { %v46_v31 = vsel %vm45_vm2, 1.0, %v343_v30 }
  0x88   :  { %v48_v12 = vmul.f32 0.3275911, %v47_v11  ;;  %v61_v14 = vsub.f32 0.0, %v47_v11 }
  0x8a   :  { %v49_v13 = vadd.f32 1.0, %v48_v12  ;;  %v62_v15 = vmul.f32 %v61_v14, %v47_v11 }
  0x8c   :  { %311 = vrcp.f32 %v49_v13  ;;  %v63_v18 = vmul.f32 1.442695, %v62_v15 }
  0x8e   :  { %313 = vpow2.f32 %v63_v18 }
  0x99   :  { %v312_v16 = vpop.eup %311 }
  0x9a   :  { %v52_v17 = vmul.f32 1.0614054, %v312_v16 }
  0x9b   :  { %v314_v27 = vpop.eup %313 }
  0x9c   :  { %v53_v19 = vadd.f32 -1.4531521, %v52_v17 }
  0x9e   :  { %v54_v20 = vmul.f32 %v312_v16, %v53_v19 }
  0xa0   :  { %v55_v21 = vadd.f32 1.4214138, %v54_v20 }
  0xa2   :  { %v56_v22 = vmul.f32 %v312_v16, %v55_v21 }
  0xa4   :  { %v57_v23 = vadd.f32 -0.28449672, %v56_v22 }
  0xa6   :  { %v58_v24 = vmul.f32 %v312_v16, %v57_v23 }
  0xa8   :  { %v59_v25 = vadd.f32 0.2548296, %v58_v24 }
  0xaa   :  { %v60_v26 = vmul.f32 %v312_v16, %v59_v25  ;;  %v209_v25 = vld [vmem:[%s458_s2] sm:$0xf] }
  0xac   :  { %v65_v28 = vmul.f32 %v314_v27, %v60_v26 }
  0xae   :  { %v66_v29 = vsub.f32 1.0, %v65_v28 }
  0xb0   :  { %v67_v32 = vmul.f32 %v66_v29, %v46_v31 }
  0xb2   :  { %v68_v34 = vadd.f32 1.0, %v67_v32 }
  0xb4   :  { %v69_v35 = vmul.f32 %v68_v34, %v43_v33 }
  0xb6   :  { %83 = vst.msk [vmem:[#allocation2 + $0x8] sm:$0xff] %vm82_vm3, %v69_v35  ;;  %88 = vrot.lane.b32.xlu1 %v69_v35, %s344_s0 }
  0xb7   :  { %85 = vst.msk [vmem:[#allocation2 + $0x8] sm:$0xff] %vm84_vm4, %v69_v35 }
  0xba   :  { %73 = vrot.lane.b32.xlu1 %v69_v35, %s345_s4 }
  0xbe   :  { %161 = vperm.xlu1 %310, %v158_v36   ;;  %v99_v43 = vld [vmem:[#allocation2 + $0x8] sm:$0xff] }
 0x128   :  { %v89_v37 = vpop.permute.xlu1 %88 }
 0x129   :  { %92 = vst.msk [vmem:[#allocation2 + $0x10] sm:$0xff] %vm91_vm6, %v89_v37 }
 0x12a   :  { %94 = vst.msk [vmem:[#allocation2 + $0x10] sm:$0xff] %vm93_vm7, %v342_v4 }
 0x12b   :  { %96 = vst.msk [vmem:[#allocation2 + $0x10] sm:$0xff] %vm95_vm8, %v89_v37 }
 0x12c   :  { %v74_v38 = vpop.permute.xlu1 %73 }
 0x12d   :  { %77 = vst.msk [vmem:[#allocation2] sm:$0xff] %vm76_vm9, %v74_v38 }
 0x12e   :  { %79 = vst.msk [vmem:[#allocation2] sm:$0xff] %vm78_vm10, %v342_v4 }
 0x12f   :  { %81 = vst.msk [vmem:[#allocation2] sm:$0xff] %vm80_vm11, %v74_v38 }
 0x132   :  { %v100_v39 = vld [vmem:[#allocation2 + $0x10] sm:$0xff] }
 0x133   :  { %v102_v40 = vpack.c.bf16 %v100_v39, %v100_v39 }
 0x135   :  { %v109_v41 = vsel %vm107_vm12, %v102_v40, 0 }
 0x136   :  { %287 = vmatpush3.bf16.msra.mxu0 %v109_v41  ;;  %v98_v42 = vld [vmem:[#allocation2] sm:$0xff] }
 0x137   :  { %288 = vmatprep.subr.bf16.mxu0 %v342_v4  ;;  %v101_v44 = vpack.c.bf16 %v99_v43, %v98_v42 }
 0x139   :  { %v162_v48 = vpop.permute.xlu1 %161 }
 0x13a   :  { %289 = vmatpush3.bf16.msra.mxu0 %v101_v44 }
 0x13d   :  { %291 = vmatmul.mubr.msk.bf16.vlgmr.msra.gmra.mxu0 %vm103_vm13, %v97_v45 }
 0x1fd   :  { %v145_v47 = vpop.f32.mrf.mxu0 }
 0x1fe   :  { %v157_v49 = vmul.f32 %v155_v46, %v145_v47 }
 0x1ff   :  { %v292_v50 = vpop.f32.mrf.mxu0 }
 0x200   :  { %v164_v51 = vadd.f32 %v162_v48, %v157_v49 }
 0x201   :  { %v148_v52 = vpop.f32.mrf.mxu0 }
 0x202   :  { %v166_v53 = vmul.f32 0.70710677, %v164_v51  ;;  %v165_v14 = vmul.f32 0.5, %v164_v51 }
 0x203   :  { %v293_v54 = vpop.f32.mrf.mxu0 }
 0x204   :  { %v169_v55 = vand.u32 2147483647, %v166_v53  ;;  %vm167_vm14 = vcmp.ge.f32.partialorder %v166_v53, 0.0 }
 0x205   :  { %v168_v12 = vsel %vm167_vm14, 1.0, %v343_v30 }
 0x206   :  { %v170_v56 = vmul.f32 0.3275911, %v169_v55  ;;  %v183_v58 = vsub.f32 0.0, %v169_v55 }
 0x208   :  { %v171_v57 = vadd.f32 1.0, %v170_v56  ;;  %v184_v59 = vmul.f32 %v183_v58, %v169_v55 }
 0x20a   :  { %315 = vrcp.f32 %v171_v57  ;;  %v185_v62 = vmul.f32 1.442695, %v184_v59 }
 0x20c   :  { %317 = vpow2.f32 %v185_v62 }
 0x217   :  { %v316_v60 = vpop.eup %315 }
 0x218   :  { %v174_v61 = vmul.f32 1.0614054, %v316_v60 }
 0x219   :  { %v318_v9 = vpop.eup %317 }
 0x21a   :  { %v175_v63 = vadd.f32 -1.4531521, %v174_v61 }
 0x21c   :  { %v176_v0 = vmul.f32 %v316_v60, %v175_v63 }
 0x21e   :  { %v177_v1 = vadd.f32 1.4214138, %v176_v0 }
 0x220   :  { %v178_v2 = vmul.f32 %v316_v60, %v177_v1 }
 0x222   :  { %v179_v3 = vadd.f32 -0.28449672, %v178_v2 }
 0x224   :  { %v180_v5 = vmul.f32 %v316_v60, %v179_v3 }
 0x226   :  { %v181_v7 = vadd.f32 0.2548296, %v180_v5 }
 0x228   :  { %v182_v8 = vmul.f32 %v316_v60, %v181_v7 }
 0x22a   :  { %v187_v10 = vmul.f32 %v318_v9, %v182_v8 }
 0x22c   :  { %v188_v11 = vsub.f32 1.0, %v187_v10 }
 0x22e   :  { %v189_v13 = vmul.f32 %v188_v11, %v168_v12 }
 0x230   :  { %v190_v15 = vadd.f32 1.0, %v189_v13 }
 0x232   :  { %v191_v16 = vmul.f32 %v190_v15, %v165_v14 }
 0x234   :  { %200 = vst.msk [vmem:[#allocation3 + $0x8] sm:$0xff] %vm82_vm3, %v191_v16  ;;  %194 = vrot.lane.b32.xlu1 %v191_v16, %s345_s4  ;;  %203 = vrot.lane.b32.xlu0 %v191_v16, %s344_s0 }
 0x235   :  { %201 = vst.msk [vmem:[#allocation3 + $0x8] sm:$0xff] %vm84_vm4, %v191_v16 }
 0x23c   :  { %v211_v23 = vld [vmem:[#allocation3 + $0x8] sm:$0xff] }
 0x2a6   :  { %v195_v17 = vpop.permute.xlu1 %194  ;;  %v204_v18 = vpop.permute.xlu0 %203 }
 0x2a7   :  { %197 = vst.msk [vmem:[#allocation3] sm:$0xff] %vm76_vm9, %v195_v17 }
 0x2a8   :  { %206 = vst.msk [vmem:[#allocation3 + $0x10] sm:$0xff] %vm91_vm6, %v204_v18 }
 0x2a9   :  { %198 = vst.msk [vmem:[#allocation3] sm:$0xff] %vm78_vm10, %v342_v4 }
 0x2aa   :  { %207 = vst.msk [vmem:[#allocation3 + $0x10] sm:$0xff] %vm93_vm7, %v342_v4 }
 0x2ab   :  { %199 = vst.msk [vmem:[#allocation3] sm:$0xff] %vm80_vm11, %v195_v17 }
 0x2ac   :  { %208 = vst.msk [vmem:[#allocation3 + $0x10] sm:$0xff] %vm95_vm8, %v204_v18 }
 0x2b2   :  { %v210_v22 = vld [vmem:[#allocation3] sm:$0xff] }
 0x2b3   :  { %v212_v19 = vld [vmem:[#allocation3 + $0x10] sm:$0xff]  ;;  %v213_v24 = vpack.c.bf16 %v211_v23, %v210_v22 }
 0x2b4   :  { %v214_v20 = vpack.c.bf16 %v212_v19, %v212_v19 }
 0x2b6   :  { %v220_v21 = vsel %vm107_vm12, %v214_v20, 0 }
 0x2b7   :  { %295 = vmatpush3.bf16.msra.mxu1 %v220_v21 }
 0x2b8   :  { %296 = vmatprep.subr.bf16.mxu1 %v342_v4 }
 0x2bb   :  { %297 = vmatpush3.bf16.msra.mxu1 %v213_v24 }
 0x2be   :  { %299 = vmatmul.mubr.msk.bf16.vlgmr.msra.gmra.mxu1 %vm103_vm13, %v209_v25 }
 0x37e   :  { %v256_v26 = vpop.f32.mrf.mxu1 }
 0x37f   :  { %v257_v27 = vadd.f32 %v256_v26, %v404_v6 }
 0x380   :  { %v300_v28 = vpop.f32.mrf.mxu1 }
 0x381   :  { %263 = vst.msk [vmem:[#allocation4] sm:$0xff] %vm262_vm15, %v257_v27 }
 0x382   :  { %v259_v29 = vpop.f32.mrf.mxu1 }
 0x383   :  { %330 = shalt.err (!%p327_p4)
}
 0x384   :  { %273 = dma.vmem_to_hbm [thread:$0]  %s271_s12, 128, %s463_s7, [#allocation5]   ;;  %v301_v4 = vpop.f32.mrf.mxu1 }
 0x385   :  { %339 = dma.done.wait [#allocation5], 128  }
 0x386   :  { %340 = vsyncadd [#allocation5], 4294967168 }
 0x387   :  { %277 = vsyncpa [#allocation5], 1 }

</bundles_post_ra>
